<compile_context>
chip_gen: v7x
topology: tpu7x:2x2x1
jax: 0.10.0
libtpu: 0.0.40
codegen_flags: <defaults>
</compile_context>

<pallas_src>
import jax
import jax.numpy as jnp
from jax.experimental import pallas as pl
from jax.experimental.pallas import tpu as pltpu


def _round_up(v, m):
    return ((v + m - 1) // m) * m


def _cdiv(a, b):
    return -(-a // b)


def _ffn_kernel(x_ref, w1_ref, b1_ref, w2_ref, b2_ref, o_ref, acc_ref):
    # x_ref:  (tm, n_pad)   storage dtype (cast to bf16 in-kernel)
    # w1_ref: (n_pad, th)   bf16    b1_ref: (1, th)     f32
    # w2_ref: (th, n_pad)   bf16    b2_ref: (1, n_pad)  f32
    # o_ref:  (tm, n_pad)           acc_ref: (tm, n_pad) f32 scratch
    j = pl.program_id(1)

    @pl.when(j == 0)
    def _():
        acc_ref[...] = jnp.zeros_like(acc_ref)

    x = x_ref[...].astype(w1_ref.dtype)                 # cast on VPU, no HBM pass
    h = jnp.dot(x, w1_ref[...], preferred_element_type=jnp.float32)
    h = jnp.maximum(h + b1_ref[...], 0.0)               # bias + ReLU in f32
    acc_ref[...] += jnp.dot(h.astype(w2_ref.dtype), w2_ref[...],
                            preferred_element_type=jnp.float32)

    @pl.when(j == pl.num_programs(1) - 1)
    def _():
        o_ref[...] = (acc_ref[...] + b2_ref[...]).astype(o_ref.dtype)


def _tpu_vmem_capacity_bytes():
    try:
        info = pltpu.get_tpu_info()
        cap = getattr(info, "vmem_capacity_bytes", None)
        if cap:
            return int(cap)
    except Exception:
        pass
    return 64 * 1024 * 1024          # conservative fallback (v7x per-TC VMEM)


def _vmem_estimate(tm, th, n_pad, x_bytes, cdt_bytes, out_bytes):
    return (2 * tm * n_pad * x_bytes            # x tile (double-buffered)
            + tm * n_pad * cdt_bytes            # in-kernel bf16 cast of x
            + 2 * n_pad * th * cdt_bytes        # W1 tile (double-buffered)
            + 2 * th * n_pad * cdt_bytes        # W2 tile (double-buffered)
            + 2 * 8 * (th + n_pad) * 4          # biases (sublane-padded)
            + 2 * tm * n_pad * out_bytes        # output tile (double-buffered)
            + tm * n_pad * 4                    # f32 accumulator scratch
            + tm * th * 4 + tm * th * cdt_bytes)  # h intermediate (f32 + cast)


def _choose_tiles(M, n_embd, hidden, x_bytes, cdt_bytes, out_bytes,
                  budget, tm_max, th_max, align, force_two_row_tiles):
    n_pad = _round_up(n_embd, align)
    hidden_al = _round_up(hidden, align)
    tm_cap = max(16, min(tm_max, _round_up(M, 16)))
    th_cap = max(align, min(th_max, hidden_al))
    while True:
        nm = max(1, _cdiv(M, tm_cap))
        if force_two_row_tiles and nm < 2 and M >= 512:
            nm = 2                                  # keep both v7x TCs busy
        tm = max(16, _round_up(_cdiv(M, nm), 16))
        nh = max(1, _cdiv(hidden_al, th_cap))
        th = _round_up(_cdiv(hidden_al, nh), align)
        est = _vmem_estimate(tm, th, n_pad, x_bytes, cdt_bytes, out_bytes)
        if est <= budget:
            break
        # Over budget: shrink hidden tile first (keeping tm large minimizes
        # W1/W2 re-reads), then the row tile, then hidden again.
        if th_cap > max(align, 512):
            th_cap //= 2
        elif tm_cap > 256:
            tm_cap //= 2
        elif th_cap > align:
            th_cap //= 2
        else:
            break
    return tm, nm, th, nh, n_pad, est


def _maybe_pad2(a, rows, cols):
    pr, pc = rows - a.shape[0], cols - a.shape[1]
    if pr == 0 and pc == 0:
        return a                                   # skip the extra HBM pass
    return jnp.pad(a, ((0, pr), (0, pc)))


def feed_forward(x, w1, b1, w2, b2, *, tm_max=1024, th_max=2048,
                 compute_dtype=jnp.bfloat16):
    """x: (tokens, n_embd); w1: (n_embd, 4n); b1: (4n,); w2: (4n, n_embd); b2: (n_embd,).

    Weights are stored transposed relative to PyTorch nn.Linear, i.e.
    (in_features, out_features), so the kernel does plain row-major matmuls.
    Matmuls run in bf16 with f32 accumulation (not exact f32 Linear semantics).
    """
    M, n_embd = x.shape
    hidden = w1.shape[1]
    assert w1.shape == (n_embd, hidden)
    assert w2.shape == (hidden, n_embd)
    assert b1.shape == (hidden,) and b2.shape == (n_embd,)
    out_dtype = x.dtype
    cdt = jnp.dtype(compute_dtype)
    x_bytes = jnp.dtype(x.dtype).itemsize
    out_bytes = jnp.dtype(out_dtype).itemsize

    # ---- generation-aware budgets / alignment -------------------------------
    vmem_cap = _tpu_vmem_capacity_bytes()
    budget = (vmem_cap * 3) // 4                    # ~96 MiB v5e/v6e, ~48 MiB v7x
    align = 256                                     # 256x256 MXU on v6e/v7x
    force_two = vmem_cap <= 96 * 1024 * 1024        # v7x-like: 2 TCs, 64 MiB/TC

    tm, nm, th, nh, n_pad, vmem_est = _choose_tiles(
        M, n_embd, hidden, x_bytes, cdt.itemsize, out_bytes,
        budget, tm_max, th_max, align, force_two)
    m_pad, h_pad = nm * tm, nh * th

    # ---- padding / one-time weight cast (skipped when already aligned) ------
    xp = _maybe_pad2(x, m_pad, n_pad)
    w1c = w1 if w1.dtype == cdt else w1.astype(cdt)
    w2c = w2 if w2.dtype == cdt else w2.astype(cdt)
    w1p = _maybe_pad2(w1c, n_pad, h_pad)
    w2p = _maybe_pad2(w2c, h_pad, n_pad)
    b1p = _maybe_pad2(b1.astype(jnp.float32).reshape(1, hidden), 1, h_pad)
    b2p = _maybe_pad2(b2.astype(jnp.float32).reshape(1, n_embd), 1, n_pad)

    vmem_limit = int(max(32 * 1024 * 1024,
                         min(int(vmem_est * 1.3), (vmem_cap * 7) // 8)))

    cost = pl.CostEstimate(
        flops=4 * m_pad * n_pad * h_pad,            # two matmuls, 2*M*K*N each
        transcendentals=0,
        bytes_accessed=int(
            m_pad * n_pad * x_bytes
            + nm * 2 * n_pad * h_pad * cdt.itemsize   # W1+W2 re-read per row tile
            + (h_pad + n_pad) * 4
            + m_pad * n_pad * out_bytes),
    )

    out_padded = pl.pallas_call(
        _ffn_kernel,
        out_shape=jax.ShapeDtypeStruct((m_pad, n_pad), out_dtype),
        grid_spec=pltpu.PrefetchScalarGridSpec(
            num_scalar_prefetch=0,
            grid=(nm, nh),
            in_specs=[
                pl.BlockSpec((tm, n_pad), lambda i, j: (i, 0)),   # x rows (j-invariant)
                pl.BlockSpec((n_pad, th), lambda i, j: (0, j)),   # W1 column tile
                pl.BlockSpec((1, th), lambda i, j: (0, j)),       # b1 tile
                pl.BlockSpec((th, n_pad), lambda i, j: (j, 0)),   # W2 row tile
                pl.BlockSpec((1, n_pad), lambda i, j: (0, 0)),    # b2 (invariant)
            ],
            out_specs=pl.BlockSpec((tm, n_pad), lambda i, j: (i, 0)),
            scratch_shapes=[pltpu.VMEM((tm, n_pad), jnp.float32)],
        ),
        compiler_params=pltpu.CompilerParams(
            dimension_semantics=("parallel", "arbitrary"),
            vmem_limit_bytes=vmem_limit),
        cost_estimate=cost,
    )(xp, w1p, b1p, w2p, b2p)

    if m_pad == M and n_pad == n_embd:
        return out_padded
    return out_padded[:M, :n_embd]


if __name__ == "__main__":
    key = jax.random.PRNGKey(0)
    batch, seq, n_embd = 2, 8, 32
    hidden = 4 * n_embd

    k_x, k_w1, k_b1, k_w2, k_b2 = jax.random.split(key, 5)

    # Deterministic params (nn.Linear shapes, weights stored transposed:
    # (in_features, out_features)).
    x = jax.random.normal(k_x, (batch, seq, n_embd), dtype=jnp.float32)
    w1 = jax.random.normal(k_w1, (n_embd, hidden), dtype=jnp.float32) * 0.02
    b1 = jax.random.normal(k_b1, (hidden,), dtype=jnp.float32) * 0.02
    w2 = jax.random.normal(k_w2, (hidden, n_embd), dtype=jnp.float32) * 0.02
    b2 = jax.random.normal(k_b2, (n_embd,), dtype=jnp.float32) * 0.02

    x_flat = x.reshape(batch * seq, n_embd)
    out_flat = feed_forward(x_flat, w1, b1, w2, b2)
    out = out_flat.reshape(batch, seq, n_embd)
    jax.block_until_ready(out)

    # Pure-JAX f32 reference (kernel runs matmuls in bf16 with f32 accumulation,
    # so tolerance is loosened accordingly).
    ref = jnp.maximum(x @ w1 + b1, 0.0) @ w2 + b2
    assert jnp.allclose(out, ref, atol=2e-2, rtol=2e-2), "mismatch vs reference"

    print("KERNEL_OK")
</pallas_src>

<mosaic_0001>
module attributes {stable_mosaic.version = 11 : i64} {
  func.func @_ffn_kernel(%arg0: i32, %arg1: i32, %arg2: memref<16x256xf32, #tpu.memory_space<vmem>>, %arg3: memref<256x256xbf16, #tpu.memory_space<vmem>>, %arg4: memref<1x256xf32, #tpu.memory_space<vmem>>, %arg5: memref<256x256xbf16, #tpu.memory_space<vmem>>, %arg6: memref<1x256xf32, #tpu.memory_space<vmem>>, %arg7: memref<16x256xf32, #tpu.memory_space<vmem>>, %arg8: memref<16x256xf32, #tpu.memory_space<vmem>>) attributes {dimension_semantics = [#tpu.dimension_semantics<parallel>, #tpu.dimension_semantics<arbitrary>], iteration_bounds = array<i64: 1, 1>, scalar_prefetch = 0 : i64, scratch_operands = 1 : i64, tpu.core_type = #tpu.core_type<tc>, window_params = [{transform_indices = @transform_0, window_bounds = array<i64: 16, 256>}, {transform_indices = @transform_1, window_bounds = array<i64: 256, 256>}, {transform_indices = @transform_2, window_bounds = array<i64: 1, 256>}, {transform_indices = @transform_3, window_bounds = array<i64: 256, 256>}, {pipeline_mode = #tpu.pipeline_mode<synchronous>, transform_indices = @transform_4, window_bounds = array<i64: 1, 256>}, {transform_indices = @transform_5, window_bounds = array<i64: 16, 256>}]} {
    %c0_i32 = arith.constant 0 : i32
    %0 = arith.cmpi eq, %arg1, %c0_i32 : i32
    %1 = arith.extui %0 : i1 to i32
    %c0_i32_0 = arith.constant 0 : i32
    %2 = arith.cmpi ne, %1, %c0_i32_0 : i32
    scf.if %2 {
      %cst_16 = arith.constant 0.000000e+00 : f32
      %21 = vector.broadcast %cst_16 : f32 to vector<16x256xf32>
      %c0_17 = arith.constant 0 : index
      %c0_18 = arith.constant 0 : index
      %22 = vector.load %arg8[%c0_17, %c0_18] : memref<16x256xf32, #tpu.memory_space<vmem>>, vector<16x256xf32>
      tpu.vector_store %arg8[%c0_17, %c0_18], %21 {strides = array<i32>} : memref<16x256xf32, #tpu.memory_space<vmem>>, vector<16x256xf32>,
    } else {
    }
    %c0 = arith.constant 0 : index
    %c0_1 = arith.constant 0 : index
    %3 = vector.load %arg2[%c0, %c0_1] : memref<16x256xf32, #tpu.memory_space<vmem>>, vector<16x256xf32>
    %4 = arith.truncf %3 : vector<16x256xf32> to vector<16x256xbf16>
    %c0_2 = arith.constant 0 : index
    %c0_3 = arith.constant 0 : index
    %5 = vector.load %arg3[%c0_2, %c0_3] : memref<256x256xbf16, #tpu.memory_space<vmem>>, vector<256x256xbf16>
    %cst = arith.constant dense<0.000000e+00> : vector<16x256xf32>
    %6 = tpu.matmul %4, %5, %cst {dimension_numbers = #tpu.dot_dimension_numbers<[1], [0], [0], [1], [0, 0, 1, 1], [], []>} : vector<16x256xbf16>, vector<256x256xbf16>, vector<16x256xf32> -> vector<16x256xf32>
    %c0_4 = arith.constant 0 : index
    %c0_5 = arith.constant 0 : index
    %7 = vector.load %arg4[%c0_4, %c0_5] : memref<1x256xf32, #tpu.memory_space<vmem>>, vector<1x256xf32>
    %8 = vector.broadcast %7 : vector<1x256xf32> to vector<16x256xf32>
    %9 = arith.addf %6, %8 : vector<16x256xf32>
    %cst_6 = arith.constant 0.000000e+00 : f32
    %10 = vector.broadcast %cst_6 : f32 to vector<16x256xf32>
    %11 = arith.maximumf %9, %10 : vector<16x256xf32>
    %c0_7 = arith.constant 0 : index
    %c0_8 = arith.constant 0 : index
    %12 = vector.load %arg8[%c0_7, %c0_8] : memref<16x256xf32, #tpu.memory_space<vmem>>, vector<16x256xf32>
    %13 = arith.truncf %11 : vector<16x256xf32> to vector<16x256xbf16>
    %c0_9 = arith.constant 0 : index
    %c0_10 = arith.constant 0 : index
    %14 = vector.load %arg5[%c0_9, %c0_10] : memref<256x256xbf16, #tpu.memory_space<vmem>>, vector<256x256xbf16>
    %cst_11 = arith.constant dense<0.000000e+00> : vector<16x256xf32>
    %15 = tpu.matmul %13, %14, %cst_11 {dimension_numbers = #tpu.dot_dimension_numbers<[1], [0], [0], [1], [0, 0, 1, 1], [], []>} : vector<16x256xbf16>, vector<256x256xbf16>, vector<16x256xf32> -> vector<16x256xf32>
    %16 = arith.addf %12, %15 : vector<16x256xf32>
    %c0_12 = arith.constant 0 : index
    %c0_13 = arith.constant 0 : index
    %17 = vector.load %arg8[%c0_12, %c0_13] : memref<16x256xf32, #tpu.memory_space<vmem>>, vector<16x256xf32>
    tpu.vector_store %arg8[%c0_12, %c0_13], %16 {strides = array<i32>} : memref<16x256xf32, #tpu.memory_space<vmem>>, vector<16x256xf32>,
    %c0_i32_14 = arith.constant 0 : i32
    %18 = arith.cmpi eq, %arg1, %c0_i32_14 : i32
    %19 = arith.extui %18 : i1 to i32
    %c0_i32_15 = arith.constant 0 : i32
    %20 = arith.cmpi ne, %19, %c0_i32_15 : i32
    scf.if %20 {
      %c0_16 = arith.constant 0 : index
      %c0_17 = arith.constant 0 : index
      %21 = vector.load %arg8[%c0_16, %c0_17] : memref<16x256xf32, #tpu.memory_space<vmem>>, vector<16x256xf32>
      %c0_18 = arith.constant 0 : index
      %c0_19 = arith.constant 0 : index
      %22 = vector.load %arg6[%c0_18, %c0_19] : memref<1x256xf32, #tpu.memory_space<vmem>>, vector<1x256xf32>
      %23 = vector.broadcast %22 : vector<1x256xf32> to vector<16x256xf32>
      %24 = arith.addf %21, %23 : vector<16x256xf32>
      %c0_20 = arith.constant 0 : index
      %c0_21 = arith.constant 0 : index
      %25 = vector.load %arg7[%c0_20, %c0_21] : memref<16x256xf32, #tpu.memory_space<vmem>>, vector<16x256xf32>
      tpu.vector_store %arg7[%c0_20, %c0_21], %24 {strides = array<i32>} : memref<16x256xf32, #tpu.memory_space<vmem>>, vector<16x256xf32>,
    } else {
    }
    return
  }
  func.func @transform_0(%arg0: i32, %arg1: i32) -> (i32, i32) {
    %c0_i32 = arith.constant 0 : i32
    %c0_i32_0 = arith.constant 0 : i32
    return %arg0, %c0_i32 : i32, i32
  }
  func.func @transform_1(%arg0: i32, %arg1: i32) -> (i32, i32) {
    %c0_i32 = arith.constant 0 : i32
    %c0_i32_0 = arith.constant 0 : i32
    return %c0_i32, %arg1 : i32, i32
  }
  func.func @transform_2(%arg0: i32, %arg1: i32) -> (i32, i32) {
    %c0_i32 = arith.constant 0 : i32
    %c0_i32_0 = arith.constant 0 : i32
    return %c0_i32, %arg1 : i32, i32
  }
  func.func @transform_3(%arg0: i32, %arg1: i32) -> (i32, i32) {
    %c0_i32 = arith.constant 0 : i32
    %c0_i32_0 = arith.constant 0 : i32
    return %arg1, %c0_i32 : i32, i32
  }
  func.func @transform_4(%arg0: i32, %arg1: i32) -> (i32, i32) {
    %c0_i32 = arith.constant 0 : i32
    %c0_i32_0 = arith.constant 0 : i32
    %c0_i32_1 = arith.constant 0 : i32
    return %c0_i32, %c0_i32_0 : i32, i32
  }
  func.func @transform_5(%arg0: i32, %arg1: i32) -> (i32, i32) {
    %c0_i32 = arith.constant 0 : i32
    %c0_i32_0 = arith.constant 0 : i32
    return %arg0, %c0_i32 : i32, i32
  }
}

</mosaic_0001>

<bundles_post_ra>
// kernel: tpu_custom_call.1
= control target key start
LH: loop header
LB: loop body
LE: loop exit
PB: predicated region body
PF: predicated region fallthrough
CT: control target
= control target key end

     0   :  { %10 = vsyncpa [#allocation4], 0  ;;  %s987_s0 = inlined_call_operand.hbm [shape: f32[16,256], index: 0, kind: input, shape index: {}]   ;;  %s988_s1 = inlined_call_operand.hbm [shape: bf16[256,256], index: 1, kind: input, shape index: {}]   ;;  %s989_s2 = inlined_call_operand.vmem [shape: f32[1,256], index: 2, kind: input, shape index: {}]   ;;  %s990_s3 = inlined_call_operand.hbm [shape: bf16[256,256], index: 3, kind: input, shape index: {}]   ;;  %s991_s4 = inlined_call_operand.vmem [shape: f32[1,256], index: 4, kind: input, shape index: {}]   ;;  %s992_s5 = inlined_call_operand.hbm [shape: f32[16,256], index: 5, kind: output, shape index: {}]  }
   0x1   :  { %11 = vsyncpa [#allocation7], 0 }
   0x2   :  { %12 = vsyncpa [#allocation5], 0  ;;  %s883_s18 = smov [#allocation6]   ;;  %s789_s22 = scalar_lea.hbm %s988_s1, 4096 }
   0x3   :  { %s30_s19 = sshll.u32 %s883_s18, 4  ;;  %p790_p0 = scmp.ne.s32.totalorder %s988_s1, %s789_s22  ;;  %s31_s19 = int_to_ptr.vmem [resolvable:$true] %s30_s19 }
   0x4   :  { %p793_p1 = scmp.lt.u32.totalorder %s789_s22, %s988_s1 }
   0x6   :  { %p795_p2 = pnand %p793_p1, %p790_p0 }
   0x8   :  { %798 = shalt.err (!%p795_p2)
}
   0x9   :  { %s799_s27 = scalar_lea.vmem %s31_s19, 4096  ;;  %p804_p4 = scmp.lt.s32.totalorder %s31_s19, %s31_s19 }
   0xa   :  { %p800_p3 = scmp.ne.s32.totalorder %s31_s19, %s799_s27  ;;  %p805_p5 = scmp.lt.s32.totalorder %s799_s27, %s799_s27 }
   0xc   :  { %p806_p6 = por %p805_p5, %p804_p4 }
   0xe   :  { %p807_p7 = pnand %p806_p6, %p800_p3 }
  0x10   :  { %810 = shalt.err (!%p807_p7)
}
  0x11   :  { %s884_s28 = smov 128   ;;  %s885_s29 = smov 8  }
  0x12   :  { %36 = dma.hbm_to_vmem [thread:$0]  %s988_s1, 4096, %s31_s19, [#allocation7], %s884_s28, %s884_s28, %s885_s29  }
  0x13   :  { %s886_s7 = smov [#allocation3]   ;;  %s811_s11 = scalar_lea.hbm %s987_s0, 512 }
  0x14   :  { %s18_s8 = sshll.u32 %s886_s7, 4  ;;  %p812_p8 = scmp.ne.s32.totalorder %s987_s0, %s811_s11  ;;  %s19_s8 = int_to_ptr.vmem [resolvable:$true] %s18_s8 }
  0x15   :  { %p815_p9 = scmp.lt.u32.totalorder %s811_s11, %s987_s0 }
  0x17   :  { %p817_p10 = pnand %p815_p9, %p812_p8 }
  0x19   :  { %820 = shalt.err (!%p817_p10)
}
  0x1a   :  { %s821_s16 = scalar_lea.vmem %s19_s8, 512  ;;  %p826_p12 = scmp.lt.s32.totalorder %s19_s8, %s19_s8 }
  0x1b   :  { %p822_p11 = scmp.ne.s32.totalorder %s19_s8, %s821_s16  ;;  %p827_p13 = scmp.lt.s32.totalorder %s821_s16, %s821_s16 }
  0x1d   :  { %p828_p0 = por %p827_p13, %p826_p12 }
  0x1f   :  { %p829_p1 = pnand %p828_p0, %p822_p11 }
  0x21   :  { %832 = shalt.err (!%p829_p1)
}
  0x22   :  { %s887_s1 = smov 256   ;;  %s888_s17 = smov 16  }
  0x23   :  { %24 = dma.hbm_to_vmem [thread:$0]  %s987_s0, 512, %s19_s8, [#allocation4], %s887_s1, %s887_s1, %s888_s17  }
  0x24   :  { %s889_s20 = smov [#allocation8]   ;;  %s833_s24 = scalar_lea.hbm %s990_s3, 4096 }
  0x25   :  { %s44_s21 = sshll.u32 %s889_s20, 4  ;;  %p834_p2 = scmp.ne.s32.totalorder %s990_s3, %s833_s24  ;;  %s45_s21 = int_to_ptr.vmem [resolvable:$true] %s44_s21 }
  0x26   :  { %p837_p3 = scmp.lt.u32.totalorder %s833_s24, %s990_s3 }
  0x28   :  { %p839_p4 = pnand %p837_p3, %p834_p2 }
  0x2a   :  { %842 = shalt.err (!%p839_p4)
}
  0x2b   :  { %s843_s6 = scalar_lea.vmem %s45_s21, 4096  ;;  %p848_p6 = scmp.lt.s32.totalorder %s45_s21, %s45_s21 }
  0x2c   :  { %p844_p5 = scmp.ne.s32.totalorder %s45_s21, %s843_s6  ;;  %p849_p7 = scmp.lt.s32.totalorder %s843_s6, %s843_s6 }
  0x2e   :  { %p850_p8 = por %p849_p7, %p848_p6 }
  0x30   :  { %p851_p9 = pnand %p850_p8, %p844_p5 }
  0x32   :  { %854 = shalt.err (!%p851_p9)
}
  0x33   :  { %50 = dma.hbm_to_vmem [thread:$0]  %s990_s3, 4096, %s45_s21, [#allocation7], %s884_s28, %s884_s28, %s885_s29  }
  0x34   :  { %877 = dma.done.wait [#allocation4], 512  }
  0x35   :  { %878 = vsyncadd [#allocation4], 4294966784 }
  0x36   :  { %879 = dma.done.wait [#allocation7], 8192  }
  0x37   :  { %880 = vsyncadd [#allocation7], 4294959104  ;;  %v693_v0 = vld [vmem:[#allocation6 + $0x4] ss:$8 sps:$4 sm:$0xff]   ;;  %v695_v1 = vld [vmem:[#allocation6] ss:$8 sps:$4 sm:$0xff]  }
  0x38   :  { %280 = vmatprep.subr.bf16.mxu0 %v693_v0  ;;  %v696_v2 = vld [vmem:[#allocation6 + $0x14] ss:$8 sps:$4 sm:$0xff]   ;;  %v698_v3 = vld [vmem:[#allocation6 + $0x10] ss:$8 sps:$4 sm:$0xff]   ;;  %v699_v4 = vld [vmem:[#allocation6 + $0x24] ss:$8 sps:$4 sm:$0xff]  }
  0x39   :  { %281 = vmatpush1.bf16.msra.mxu0 %v695_v1  ;;  %v701_v5 = vld [vmem:[#allocation6 + $0x20] ss:$8 sps:$4 sm:$0xff]   ;;  %v702_v6 = vld [vmem:[#allocation6 + $0x34] ss:$8 sps:$4 sm:$0xff]   ;;  %v704_v7 = vld [vmem:[#allocation6 + $0x30] ss:$8 sps:$4 sm:$0xff]  }
  0x3a   :  { %282 = vmatprep.subr.bf16.mxu0 %v696_v2  ;;  %v705_v8 = vld [vmem:[#allocation6 + $0x44] ss:$8 sps:$4 sm:$0xff]   ;;  %v707_v9 = vld [vmem:[#allocation6 + $0x40] ss:$8 sps:$4 sm:$0xff]   ;;  %v708_v10 = vld [vmem:[#allocation6 + $0x54] ss:$8 sps:$4 sm:$0xff]  }
  0x3b   :  { %v710_v11 = vld [vmem:[#allocation6 + $0x50] ss:$8 sps:$4 sm:$0xff]   ;;  %v711_v12 = vld [vmem:[#allocation6 + $0x64] ss:$8 sps:$4 sm:$0xff]   ;;  %v713_v15 = vld [vmem:[#allocation6 + $0x60] ss:$8 sps:$4 sm:$0xff]  }
  0x3c   :  { %v71_v13 = vld [vmem:[#allocation3 + $0x8] sm:$0xff]  ;;  %v73_v14 = vld [vmem:[#allocation3 + $0x18] sm:$0xff]  ;;  %v70_v55 = vld [vmem:[#allocation3] sm:$0xff]  ;;  %s890_s8 = smov [#allocation9]  }
  0x3d   :  { %283 = vmatpush1.bf16.msra.mxu0 %v698_v3  ;;  %v714_v16 = vld [vmem:[#allocation6 + $0x74] ss:$8 sps:$4 sm:$0xff]   ;;  %v75_v17 = vpack.c.bf16 %v73_v14, %v71_v13  ;;  %v741_v18 = vld [vmem:[#allocation8 + $0x4] ss:$8 sps:$4 sm:$0xff]   ;;  %v743_v19 = vld [vmem:[#allocation8] ss:$8 sps:$4 sm:$0xff]  }
  0x3e   :  { %284 = vmatprep.subr.bf16.mxu0 %v699_v4  ;;  %v744_v20 = vld [vmem:[#allocation8 + $0x14] ss:$8 sps:$4 sm:$0xff]   ;;  %525 = vmatprep.subr.bf16.mxu1 %v741_v18  ;;  %v746_v21 = vld [vmem:[#allocation8 + $0x10] ss:$8 sps:$4 sm:$0xff]   ;;  %v747_v23 = vld [vmem:[#allocation8 + $0x24] ss:$8 sps:$4 sm:$0xff]  }
  0x3f   :  { %312 = vmatprep.mubr.bf16.mxu0 %v75_v17  ;;  %526 = vmatpush1.bf16.msra.mxu1 %v743_v19  ;;  %v716_v22 = vld [vmem:[#allocation6 + $0x70] ss:$8 sps:$4 sm:$0xff]   ;;  %v717_v24 = vld [vmem:[#allocation6 + $0x84] ss:$8 sps:$4 sm:$0xff]   ;;  %v749_v25 = vld [vmem:[#allocation8 + $0x20] ss:$8 sps:$4 sm:$0xff]  }
  0x40   :  { %527 = vmatprep.subr.bf16.mxu1 %v744_v20  ;;  %v719_v26 = vld [vmem:[#allocation6 + $0x80] ss:$8 sps:$4 sm:$0xff]   ;;  %v750_v27 = vld [vmem:[#allocation8 + $0x34] ss:$8 sps:$4 sm:$0xff]   ;;  %v752_v29 = vld [vmem:[#allocation8 + $0x30] ss:$8 sps:$4 sm:$0xff]  }
  0x41   :  { %285 = vmatpush1.bf16.msra.mxu0 %v701_v5  ;;  %v720_v28 = vld [vmem:[#allocation6 + $0x94] ss:$8 sps:$4 sm:$0xff]   ;;  %v722_v30 = vld [vmem:[#allocation6 + $0x90] ss:$8 sps:$4 sm:$0xff]   ;;  %v753_v31 = vld [vmem:[#allocation8 + $0x44] ss:$8 sps:$4 sm:$0xff]  }
  0x42   :  { %286 = vmatprep.subr.bf16.mxu0 %v702_v6  ;;  %v723_v32 = vld [vmem:[#allocation6 + $0xa4] ss:$8 sps:$4 sm:$0xff]   ;;  %v755_v33 = vld [vmem:[#allocation8 + $0x40] ss:$8 sps:$4 sm:$0xff]   ;;  %v756_v35 = vld [vmem:[#allocation8 + $0x54] ss:$8 sps:$4 sm:$0xff]   ;;  %v110_v6 = vlaneseq }
  0x43   :  { %528 = vmatpush1.bf16.msra.mxu1 %v746_v21  ;;  %v725_v34 = vld [vmem:[#allocation6 + $0xa0] ss:$8 sps:$4 sm:$0xff]   ;;  %v726_v36 = vld [vmem:[#allocation6 + $0xb4] ss:$8 sps:$4 sm:$0xff]   ;;  %v758_v37 = vld [vmem:[#allocation8 + $0x50] ss:$8 sps:$4 sm:$0xff]  }
  0x44   :  { %529 = vmatprep.subr.bf16.mxu1 %v747_v23  ;;  %v728_v38 = vld [vmem:[#allocation6 + $0xb0] ss:$8 sps:$4 sm:$0xff]   ;;  %v759_v39 = vld [vmem:[#allocation8 + $0x64] ss:$8 sps:$4 sm:$0xff]   ;;  %v761_v41 = vld [vmem:[#allocation8 + $0x60] ss:$8 sps:$4 sm:$0xff]  }
  0x45   :  { %287 = vmatpush1.bf16.msra.mxu0 %v704_v7  ;;  %v729_v40 = vld [vmem:[#allocation6 + $0xc4] ss:$8 sps:$4 sm:$0xff]   ;;  %v731_v42 = vld [vmem:[#allocation6 + $0xc0] ss:$8 sps:$4 sm:$0xff]   ;;  %v762_v43 = vld [vmem:[#allocation8 + $0x74] ss:$8 sps:$4 sm:$0xff]  }
  0x46   :  { %288 = vmatprep.subr.bf16.mxu0 %v705_v8  ;;  %v732_v44 = vld [vmem:[#allocation6 + $0xd4] ss:$8 sps:$4 sm:$0xff]   ;;  %v764_v45 = vld [vmem:[#allocation8 + $0x70] ss:$8 sps:$4 sm:$0xff]   ;;  %v765_v47 = vld [vmem:[#allocation8 + $0x84] ss:$8 sps:$4 sm:$0xff]  }
  0x47   :  { %530 = vmatpush1.bf16.msra.mxu1 %v749_v25  ;;  %v734_v46 = vld [vmem:[#allocation6 + $0xd0] ss:$8 sps:$4 sm:$0xff]   ;;  %v735_v48 = vld [vmem:[#allocation6 + $0xe4] ss:$8 sps:$4 sm:$0xff]   ;;  %v767_v49 = vld [vmem:[#allocation8 + $0x80] ss:$8 sps:$4 sm:$0xff]  }
  0x48   :  { %531 = vmatprep.subr.bf16.mxu1 %v750_v27  ;;  %v737_v50 = vld [vmem:[#allocation6 + $0xe0] ss:$8 sps:$4 sm:$0xff]   ;;  %v768_v51 = vld [vmem:[#allocation8 + $0x94] ss:$8 sps:$4 sm:$0xff]   ;;  %v740_v53 = vld [vmem:[#allocation6 + $0xf0] ss:$8 sps:$4 sm:$0xff]  }
  0x49   :  { %289 = vmatpush1.bf16.msra.mxu0 %v707_v9  ;;  %v738_v52 = vld [vmem:[#allocation6 + $0xf4] ss:$8 sps:$4 sm:$0xff]   ;;  %v770_v54 = vld [vmem:[#allocation8 + $0x90] ss:$8 sps:$4 sm:$0xff]   ;;  %v771_v57 = vld [vmem:[#allocation8 + $0xa4] ss:$8 sps:$4 sm:$0xff]  }
  0x4a   :  { %290 = vmatprep.subr.bf16.mxu0 %v708_v10  ;;  %v72_v56 = vld [vmem:[#allocation3 + $0x10] sm:$0xff]  ;;  %v773_v59 = vld [vmem:[#allocation8 + $0xa0] ss:$8 sps:$4 sm:$0xff]   ;;  %v777_v62 = vld [vmem:[#allocation8 + $0xc4] ss:$8 sps:$4 sm:$0xff]   ;;  %v111_v7 = vshrl.u32 %v110_v6, 7 }
  0x4b   :  { %532 = vmatpush1.bf16.msra.mxu1 %v752_v29  ;;  %v74_v58 = vpack.c.bf16 %v72_v56, %v70_v55  ;;  %v774_v60 = vld [vmem:[#allocation8 + $0xb4] ss:$8 sps:$4 sm:$0xff]   ;;  %v776_v61 = vld [vmem:[#allocation8 + $0xb0] ss:$8 sps:$4 sm:$0xff]   ;;  %v779_v63 = vld [vmem:[#allocation8 + $0xc0] ss:$8 sps:$4 sm:$0xff]  }
  0x4c   :  { %533 = vmatprep.subr.bf16.mxu1 %v753_v31  ;;  %v780_v0 = vld [vmem:[#allocation8 + $0xd4] ss:$8 sps:$4 sm:$0xff]   ;;  %v782_v1 = vld [vmem:[#allocation8 + $0xd0] ss:$8 sps:$4 sm:$0xff]   ;;  %v783_v2 = vld [vmem:[#allocation8 + $0xe4] ss:$8 sps:$4 sm:$0xff]  }
  0x4d   :  { %291 = vmatpush1.bf16.msra.mxu0 %v710_v11  ;;  %v785_v3 = vld [vmem:[#allocation8 + $0xe0] ss:$8 sps:$4 sm:$0xff]   ;;  %v786_v4 = vld [vmem:[#allocation8 + $0xf4] ss:$8 sps:$4 sm:$0xff]   ;;  %v788_v5 = vld [vmem:[#allocation8 + $0xf0] ss:$8 sps:$4 sm:$0xff]  }
  0x4e   :  { %292 = vmatprep.subr.bf16.mxu0 %v711_v12  ;;  %v112_v8 = vsub.s32 0, %v111_v7  ;;  %v108_v9 = vld [vmem:[%s989_s2] sm:$0x3]  ;;  %v116_v10 = vsub.s32 1, %v111_v7  ;;  %s608_s9 = sshll.u32 %s890_s8, 4  ;;  %s609_s9 = int_to_ptr.vmem [resolvable:$true] %s608_s9 }
  0x4f   :  { %534 = vmatpush1.bf16.msra.mxu1 %v755_v33  ;;  %v583_v27 = vld [vmem:[%s991_s4] sm:$0x3]  ;;  %s855_s10 = scalar_lea.vmem %s609_s9, 512  ;;  %p860_p11 = scmp.lt.s32.totalorder %s609_s9, %s609_s9 }
  0x50   :  { %535 = vmatprep.subr.bf16.mxu1 %v756_v35  ;;  %v113_v11 = vrot.slane %v108_v9, %v112_v8  ;;  %v117_v12 = vrot.slane %v108_v9, %v116_v10  ;;  %v592_v29 = vrot.slane %v583_v27, %v116_v10  ;;  %p856_p10 = scmp.ne.s32.totalorder %s609_s9, %s855_s10  ;;  %p861_p12 = scmp.lt.s32.totalorder %s855_s10, %s855_s10 }
  0x51   :  { %293 = vmatpush1.bf16.msra.mxu0 %v713_v15 }
  0x52   :  { %294 = vmatprep.subr.bf16.mxu0 %v714_v16  ;;  %p862_p13 = por %p861_p12, %p860_p11 }
  0x53   :  { %536 = vmatpush1.bf16.msra.mxu1 %v758_v37 }
  0x54   :  { %537 = vmatprep.subr.bf16.mxu1 %v759_v39  ;;  %p863_p0 = pnand %p862_p13, %p856_p10 }
  0x55   :  { %295 = vmatpush1.bf16.msra.mxu0 %v716_v22 }
  0x56   :  { %296 = vmatprep.subr.bf16.mxu0 %v717_v24 }
  0x57   :  { %538 = vmatpush1.bf16.msra.mxu1 %v761_v41 }
  0x58   :  { %539 = vmatprep.subr.bf16.mxu1 %v762_v43 }
  0x59   :  { %297 = vmatpush1.bf16.msra.mxu0 %v719_v26 }
  0x5a   :  { %298 = vmatprep.subr.bf16.mxu0 %v720_v28  ;;  %v588_v28 = vrot.slane %v583_v27, %v112_v8 }
  0x5b   :  { %540 = vmatpush1.bf16.msra.mxu1 %v764_v45 }
  0x5c   :  { %541 = vmatprep.subr.bf16.mxu1 %v765_v47 }
  0x5d   :  { %299 = vmatpush1.bf16.msra.mxu0 %v722_v30 }
  0x5e   :  { %300 = vmatprep.subr.bf16.mxu0 %v723_v32 }
  0x5f   :  { %542 = vmatpush1.bf16.msra.mxu1 %v767_v49 }
  0x60   :  { %543 = vmatprep.subr.bf16.mxu1 %v768_v51 }
  0x61   :  { %301 = vmatpush1.bf16.msra.mxu0 %v725_v34 }
  0x62   :  { %302 = vmatprep.subr.bf16.mxu0 %v726_v36 }
  0x63   :  { %544 = vmatpush1.bf16.msra.mxu1 %v770_v54 }
  0x64   :  { %545 = vmatprep.subr.bf16.mxu1 %v771_v57 }
  0x65   :  { %303 = vmatpush1.bf16.msra.mxu0 %v728_v38 }
  0x66   :  { %304 = vmatprep.subr.bf16.mxu0 %v729_v40 }
  0x67   :  { %546 = vmatpush1.bf16.msra.mxu1 %v773_v59 }
  0x68   :  { %547 = vmatprep.subr.bf16.mxu1 %v774_v60 }
  0x69   :  { %305 = vmatpush1.bf16.msra.mxu0 %v731_v42 }
  0x6a   :  { %306 = vmatprep.subr.bf16.mxu0 %v732_v44 }
  0x6b   :  { %548 = vmatpush1.bf16.msra.mxu1 %v776_v61 }
  0x6c   :  { %549 = vmatprep.subr.bf16.mxu1 %v777_v62 }
  0x6d   :  { %307 = vmatpush1.bf16.msra.mxu0 %v734_v46 }
  0x6e   :  { %308 = vmatprep.subr.bf16.mxu0 %v735_v48 }
  0x6f   :  { %550 = vmatpush1.bf16.msra.mxu1 %v779_v63 }
  0x70   :  { %551 = vmatprep.subr.bf16.mxu1 %v780_v0 }
  0x71   :  { %309 = vmatpush1.bf16.msra.mxu0 %v737_v50 }
  0x72   :  { %310 = vmatprep.subr.bf16.mxu0 %v738_v52 }
  0x73   :  { %552 = vmatpush1.bf16.msra.mxu1 %v782_v1 }
  0x74   :  { %553 = vmatprep.subr.bf16.mxu1 %v783_v2 }
  0x75   :  { %311 = vmatpush1.bf16.msra.mxu0 %v740_v53 }
  0x77   :  { %554 = vmatpush1.bf16.msra.mxu1 %v785_v3 }
  0x78   :  { %313 = vmatmul.mubr.bf16.vlgmr.msra.gmra.mrb[0].mxu0 %v74_v58  ;;  %555 = vmatprep.subr.bf16.mxu1 %v786_v4 }
  0x7b   :  { %556 = vmatpush1.bf16.msra.mxu1 %v788_v5 }
 0x14b   :  { %v314_v13 = vpop.f32.mrb[0].mxu0 }
 0x14c   :  { %v315_v14 = vadd.f32 %v314_v13, %v113_v11  ;;  %v316_v15 = vpop.f32.mrb[1].mxu0 }
 0x14d   :  { %v317_v16 = vadd.f32 %v316_v15, %v117_v12  ;;  %v318_v17 = vpop.f32.mrb[2].mxu0 }
 0x14e   :  { %v319_v18 = vadd.f32 %v318_v17, %v113_v11  ;;  %v320_v19 = vpop.f32.mrb[3].mxu0  ;;  %v323_v21 = vmax.f32 %v315_v14, 0.0 }
 0x14f   :  { %v321_v20 = vadd.f32 %v320_v19, %v117_v12  ;;  %v324_v23 = vmax.f32 %v317_v16, 0.0 }
 0x150   :  { %v325_v22 = vmax.f32 %v319_v18, 0.0 }
 0x151   :  { %v326_v24 = vmax.f32 %v321_v20, 0.0 }
 0x152   :  { %v331_v25 = vpack.c.bf16 %v325_v22, %v323_v21 }
 0x153   :  { %v332_v26 = vpack.c.bf16 %v326_v24, %v324_v23 }
 0x155   :  { %557 = vmatprep.mubr.bf16.mxu1 %v332_v26 }
 0x156   :  { %558 = vmatmul.mubr.bf16.vlgmr.msra.gmra.mrb[0].mxu1 %v331_v25 }
 0x229   :  { %v559_v30 = vpop.f32.mrb[0].mxu1 }
 0x22a   :  { %v595_v31 = vadd.f32 %v588_v28, %v559_v30  ;;  %v561_v32 = vpop.f32.mrb[1].mxu1 }
 0x22b   :  { %v596_v33 = vadd.f32 %v592_v29, %v561_v32  ;;  %v563_v34 = vpop.f32.mrb[2].mxu1 }
 0x22c   :  { %599 = vst [vmem:[#allocation9] sm:$0xff] %v595_v31  ;;  %v597_v35 = vadd.f32 %v588_v28, %v563_v34  ;;  %v565_v36 = vpop.f32.mrb[3].mxu1 }
 0x22d   :  { %600 = vst [vmem:[#allocation9 + $0x8] sm:$0xff] %v596_v33  ;;  %v598_v37 = vadd.f32 %v592_v29, %v565_v36 }
 0x22e   :  { %601 = vst [vmem:[#allocation9 + $0x10] sm:$0xff] %v597_v35 }
 0x22f   :  { %602 = vst [vmem:[#allocation9 + $0x18] sm:$0xff] %v598_v37 }
 0x230   :  { %866 = shalt.err (!%p863_p0)
}
 0x231   :  { %s867_s12 = scalar_lea.hbm %s992_s5, 512 }
 0x232   :  { %p868_p1 = scmp.ne.s32.totalorder %s992_s5, %s867_s12  ;;  %p871_p2 = scmp.lt.u32.totalorder %s867_s12, %s992_s5 }
 0x234   :  { %p873_p3 = pnand %p871_p2, %p868_p1 }
 0x236   :  { %876 = shalt.err (!%p873_p3)
}
 0x237   :  { %614 = dma.vmem_to_hbm [thread:$0]  %s609_s9, 512, %s992_s5, [#allocation5], %s887_s1, %s887_s1, %s888_s17  }
 0x238   :  { %881 = dma.done.wait [#allocation5], 512  }
 0x239   :  { %882 = vsyncadd [#allocation5], 4294966784 }
 0x23a   :  { %618 = vsyncpa [#allocation4], 1 }
 0x23b   :  { %619 = vsyncpa [#allocation7], 1 }
 0x23c   :  { %620 = vsyncpa [#allocation5], 1 }

</bundles_post_ra>
